<compile_context>
chip_gen: v7x
topology: tpu7x:2x2x1
jax: 0.10.0
libtpu: 0.0.40
codegen_flags: <defaults>
</compile_context>

<pallas_src>
import jax
import jax.numpy as jnp
from jax.experimental import pallas as pl
from jax.experimental.pallas import tpu as pltpu


_LANE = 128  # vreg lane width


def _round_up(x, m):
    return ((x + m - 1) // m) * m


def _make_kernel(rows, tile_rows, ragged):
    """Build the kernel with the (static) row count / raggedness baked in."""

    def kernel(off_ref,                      # SMEM (1,) scalar prefetch: logmassoffset
               x_ref, y_ref, z_ref,          # (TR, L) position components
               vx_ref, vy_ref, vz_ref,       # (TR, L) velocity components
               logm_ref,                     # (TR, L) logmasses
               m_ref, r_ref, rcyl_ref,       # (TR, L) outputs: masses, r, rcyl
               dotp_ref):                    # (1, 1, L) per-tile lane partials of sum(pos*vel)
        off = off_ref[0]

        # masses = exp(logmasses + logmassoffset); dropout is identity (eval mode).
        m_ref[...] = jnp.exp(logm_ref[...] + off)

        x = x_ref[...]
        y = y_ref[...]
        z = z_ref[...]

        # rcyl = sqrt(x^2 + y^2); r = sqrt(x^2 + y^2 + z^2) — pure VPU/EUP
        # elementwise, full 8x128 vreg occupancy, no cross-lane/sublane work.
        r2cyl = x * x + y * y
        rcyl_ref[...] = jnp.sqrt(r2cyl)
        r_ref[...] = jnp.sqrt(r2cyl + z * z)

        # Per-tile partial of the full scalar contraction sum(pos * vel):
        # reduce over sublanes only (cheap), keep 128 lane partials so the
        # store stays lane-dense; final cross-lane/tile reduce happens in glue.
        dot = x * vx_ref[...] + y * vy_ref[...] + z * vz_ref[...]
        if ragged:
            # The last (partial) block reads unspecified data past the array
            # edge — mask those rows out of the reduction.  Lanes padded with
            # zeros (N % 128 != 0 case) already contribute 0.
            row_idx = pl.program_id(0) * tile_rows + jax.lax.broadcasted_iota(
                jnp.int32, (tile_rows, _LANE), 0)
            dot = jnp.where(row_idx < rows, dot, 0.0)
        dotp_ref[...] = jnp.sum(dot, axis=0).reshape(1, 1, -1)

    return kernel


def snapshot_forward_soa(x, y, z, vx, vy, vz, logmasses, logmassoffset, *,
                         tile_rows=1024, min_grid=4):
    """SoA entry point (preferred): six (N,) component arrays + (N,) logmasses.

    Returns (masses, r, rcyl, vr), each (N,) float32.
    Particles with r == 0 give inf/nan in vr, matching the torch reference.
    """
    n = x.shape[0]

    rows = pl.cdiv(n, _LANE)          # static Python int
    n_pad = rows * _LANE

    # Tile sizing: multiple of 8 sublanes; cap so the grid has >= min_grid
    # steps whenever the problem permits (DMA overlap + dual-TC sharding on
    # v7x), but never below 8 rows.
    tile_rows = max(8, _round_up(int(tile_rows), 8))
    cap = max(8, _round_up(pl.cdiv(rows, max(1, int(min_grid))), 8))
    tile_rows = min(tile_rows, cap)
    grid_n = pl.cdiv(rows, tile_rows)
    grid = (grid_n,)
    ragged = (rows % tile_rows) != 0

    def prep(a):
        a = jnp.asarray(a, dtype=jnp.float32).reshape(-1)
        if n != n_pad:
            # Only pad when N is not a multiple of 128 (<=127 zeros); zeros
            # contribute 0 to the dot partials and padded output lanes are
            # sliced away below.  When N % 128 == 0 this is a free bitcast.
            a = jnp.pad(a, (0, n_pad - n))
        return a.reshape(rows, _LANE)

    ins = [prep(a) for a in (x, y, z, vx, vy, vz, logmasses)]
    off = jnp.asarray(logmassoffset, dtype=jnp.float32).reshape(1)

    tile_spec = pl.BlockSpec((tile_rows, _LANE), lambda i, off: (i, 0))
    part_spec = pl.BlockSpec((1, 1, _LANE), lambda i, off: (i, 0, 0))

    kernel = _make_kernel(rows, tile_rows, ragged)

    m2, r2, rc2, dotp = pl.pallas_call(
        kernel,
        out_shape=(
            jax.ShapeDtypeStruct((rows, _LANE), jnp.float32),
            jax.ShapeDtypeStruct((rows, _LANE), jnp.float32),
            jax.ShapeDtypeStruct((rows, _LANE), jnp.float32),
            jax.ShapeDtypeStruct((grid_n, 1, _LANE), jnp.float32),
        ),
        grid_spec=pltpu.PrefetchScalarGridSpec(
            num_scalar_prefetch=1,
            grid=grid,
            in_specs=[tile_spec] * 7,
            out_specs=[tile_spec, tile_spec, tile_spec, part_spec],
        ),
        compiler_params=pltpu.CompilerParams(
            # No carried state -> grid axis is megacore-shardable.  On v7x,
            # if profiling shows only one TC pulling HBM, switch this axis to
            # pltpu.CORE_PARALLEL (only core_parallel changes codegen).
            dimension_semantics=("parallel",),
            vmem_limit_bytes=32 * 1024 * 1024,  # needed on v5e, safe on v7x
        ),
    )(off, *ins)

    masses = m2.reshape(-1)[:n]
    r = r2.reshape(-1)[:n]
    rcyl = rc2.reshape(-1)[:n]
    # Global tensordot scalar from tiny per-tile lane partials, then a
    # broadcast divide.  Consumers that can take (dot_total, r) directly
    # should do so to avoid materializing an extra N-length vr array.
    vr = jnp.sum(dotp) / r
    return masses, r, rcyl, vr


def snapshot_forward(positions, velocities, logmasses, logmassoffset, **kw):
    """Adapter from the torch (N, 3) AoS layout.

    A single fused (N,3)->(3,N) transpose per array replaces six strided
    column gathers; callers that keep the snapshot SoA should call
    `snapshot_forward_soa` directly for zero wrapper-side rearrangement.
    """
    pos_t = jnp.transpose(jnp.asarray(positions, dtype=jnp.float32))   # (3, N)
    vel_t = jnp.transpose(jnp.asarray(velocities, dtype=jnp.float32))  # (3, N)
    return snapshot_forward_soa(pos_t[0], pos_t[1], pos_t[2],
                                vel_t[0], vel_t[1], vel_t[2],
                                logmasses, logmassoffset, **kw)


def _reference(positions, velocities, logmasses, logmassoffset):
    masses = jnp.exp(logmasses + logmassoffset)
    r = jnp.linalg.norm(positions, axis=-1)
    rcyl = jnp.sqrt(positions[:, 0] ** 2 + positions[:, 1] ** 2)
    vr = jnp.sum(positions * velocities) / r
    return masses, r, rcyl, vr


if __name__ == "__main__":
    key = jax.random.PRNGKey(0)
    n = 256
    k1, k2, k3 = jax.random.split(key, 3)

    positions = jax.random.normal(k1, (n, 3), dtype=jnp.float32) * 2.0
    velocities = jax.random.normal(k2, (n, 3), dtype=jnp.float32)
    raw_masses = jax.random.uniform(k3, (n,), dtype=jnp.float32,
                                    minval=0.1, maxval=1.0)

    # Mirror SnapShot.__init__ parameterisation (deterministic, no checkpoint):
    logmassoffset = jnp.log(jnp.sum(raw_masses) / n)
    logmasses = jnp.log(raw_masses) - logmassoffset

    out = snapshot_forward(positions, velocities, logmasses, logmassoffset)
    out = jax.block_until_ready(out)

    ref = _reference(positions, velocities, logmasses, logmassoffset)
    for a, b in zip(out, ref):
        assert jnp.allclose(a, b, rtol=1e-5, atol=1e-5), "mismatch vs reference"

    # Also exercise a ragged, multi-tile shape (N not a multiple of 128) to
    # cover the in-kernel tail-mask path.
    n2 = 3000
    k4, k5, k6 = jax.random.split(jax.random.PRNGKey(1), 3)
    pos2 = jax.random.normal(k4, (n2, 3), dtype=jnp.float32)
    vel2 = jax.random.normal(k5, (n2, 3), dtype=jnp.float32)
    rm2 = jax.random.uniform(k6, (n2,), dtype=jnp.float32, minval=0.1, maxval=1.0)
    off2 = jnp.log(jnp.sum(rm2) / n2)
    lm2 = jnp.log(rm2) - off2
    out2 = jax.block_until_ready(
        snapshot_forward(pos2, vel2, lm2, off2, tile_rows=8))
    ref2 = _reference(pos2, vel2, lm2, off2)
    for a, b in zip(out2, ref2):
        assert jnp.allclose(a, b, rtol=1e-4, atol=1e-4), "mismatch vs reference (ragged)"

    print("KERNEL_OK")
</pallas_src>

<mosaic_0001>
module attributes {stable_mosaic.version = 11 : i64} {
  func.func @kernel(%arg0: i32, %arg1: memref<1xf32, #tpu.memory_space<smem>>, %arg2: memref<8x128xf32, #tpu.memory_space<vmem>>, %arg3: memref<8x128xf32, #tpu.memory_space<vmem>>, %arg4: memref<8x128xf32, #tpu.memory_space<vmem>>, %arg5: memref<8x128xf32, #tpu.memory_space<vmem>>, %arg6: memref<8x128xf32, #tpu.memory_space<vmem>>, %arg7: memref<8x128xf32, #tpu.memory_space<vmem>>, %arg8: memref<8x128xf32, #tpu.memory_space<vmem>>, %arg9: memref<8x128xf32, #tpu.memory_space<vmem>>, %arg10: memref<8x128xf32, #tpu.memory_space<vmem>>, %arg11: memref<8x128xf32, #tpu.memory_space<vmem>>, %arg12: memref<1x1x128xf32, #tpu.memory_space<vmem>>) attributes {dimension_semantics = [#tpu.dimension_semantics<parallel>], iteration_bounds = array<i64: 1>, scalar_prefetch = 1 : i64, scratch_operands = 0 : i64, tpu.core_type = #tpu.core_type<tc>, window_params = [{transform_indices = @transform_0, window_bounds = array<i64: 8, 128>}, {transform_indices = @transform_1, window_bounds = array<i64: 8, 128>}, {transform_indices = @transform_2, window_bounds = array<i64: 8, 128>}, {transform_indices = @transform_3, window_bounds = array<i64: 8, 128>}, {transform_indices = @transform_4, window_bounds = array<i64: 8, 128>}, {transform_indices = @transform_5, window_bounds = array<i64: 8, 128>}, {transform_indices = @transform_6, window_bounds = array<i64: 8, 128>}, {transform_indices = @transform_7, window_bounds = array<i64: 8, 128>}, {transform_indices = @transform_8, window_bounds = array<i64: 8, 128>}, {transform_indices = @transform_9, window_bounds = array<i64: 8, 128>}, {transform_indices = @transform_10, window_bounds = array<i64: 1, 1, 128>}]} {
    %c0 = arith.constant 0 : index
    %0 = memref.load %arg1[%c0] : memref<1xf32, #tpu.memory_space<smem>>
    %c0_0 = arith.constant 0 : index
    %c0_1 = arith.constant 0 : index
    %1 = vector.load %arg8[%c0_0, %c0_1] : memref<8x128xf32, #tpu.memory_space<vmem>>, vector<8x128xf32>
    %2 = vector.broadcast %0 : f32 to vector<8x128xf32>
    %3 = arith.addf %1, %2 : vector<8x128xf32>
    %4 = math.exp %3 : vector<8x128xf32>
    %c0_2 = arith.constant 0 : index
    %c0_3 = arith.constant 0 : index
    %5 = vector.load %arg9[%c0_2, %c0_3] : memref<8x128xf32, #tpu.memory_space<vmem>>, vector<8x128xf32>
    tpu.vector_store %arg9[%c0_2, %c0_3], %4 {strides = array<i32>} : memref<8x128xf32, #tpu.memory_space<vmem>>, vector<8x128xf32>,
    %c0_4 = arith.constant 0 : index
    %c0_5 = arith.constant 0 : index
    %6 = vector.load %arg2[%c0_4, %c0_5] : memref<8x128xf32, #tpu.memory_space<vmem>>, vector<8x128xf32>
    %c0_6 = arith.constant 0 : index
    %c0_7 = arith.constant 0 : index
    %7 = vector.load %arg3[%c0_6, %c0_7] : memref<8x128xf32, #tpu.memory_space<vmem>>, vector<8x128xf32>
    %c0_8 = arith.constant 0 : index
    %c0_9 = arith.constant 0 : index
    %8 = vector.load %arg4[%c0_8, %c0_9] : memref<8x128xf32, #tpu.memory_space<vmem>>, vector<8x128xf32>
    %9 = arith.mulf %6, %6 : vector<8x128xf32>
    %10 = arith.mulf %7, %7 : vector<8x128xf32>
    %11 = arith.addf %9, %10 : vector<8x128xf32>
    %12 = math.sqrt %11 : vector<8x128xf32>
    %c0_10 = arith.constant 0 : index
    %c0_11 = arith.constant 0 : index
    %13 = vector.load %arg11[%c0_10, %c0_11] : memref<8x128xf32, #tpu.memory_space<vmem>>, vector<8x128xf32>
    tpu.vector_store %arg11[%c0_10, %c0_11], %12 {strides = array<i32>} : memref<8x128xf32, #tpu.memory_space<vmem>>, vector<8x128xf32>,
    %14 = arith.mulf %8, %8 : vector<8x128xf32>
    %15 = arith.addf %11, %14 : vector<8x128xf32>
    %16 = math.sqrt %15 : vector<8x128xf32>
    %c0_12 = arith.constant 0 : index
    %c0_13 = arith.constant 0 : index
    %17 = vector.load %arg10[%c0_12, %c0_13] : memref<8x128xf32, #tpu.memory_space<vmem>>, vector<8x128xf32>
    tpu.vector_store %arg10[%c0_12, %c0_13], %16 {strides = array<i32>} : memref<8x128xf32, #tpu.memory_space<vmem>>, vector<8x128xf32>,
    %c0_14 = arith.constant 0 : index
    %c0_15 = arith.constant 0 : index
    %18 = vector.load %arg5[%c0_14, %c0_15] : memref<8x128xf32, #tpu.memory_space<vmem>>, vector<8x128xf32>
    %19 = arith.mulf %6, %18 : vector<8x128xf32>
    %c0_16 = arith.constant 0 : index
    %c0_17 = arith.constant 0 : index
    %20 = vector.load %arg6[%c0_16, %c0_17] : memref<8x128xf32, #tpu.memory_space<vmem>>, vector<8x128xf32>
    %21 = arith.mulf %7, %20 : vector<8x128xf32>
    %22 = arith.addf %19, %21 : vector<8x128xf32>
    %c0_18 = arith.constant 0 : index
    %c0_19 = arith.constant 0 : index
    %23 = vector.load %arg7[%c0_18, %c0_19] : memref<8x128xf32, #tpu.memory_space<vmem>>, vector<8x128xf32>
    %24 = arith.mulf %8, %23 : vector<8x128xf32>
    %25 = arith.addf %22, %24 : vector<8x128xf32>
    %c8_i32 = arith.constant 8 : i32
    %26 = arith.muli %arg0, %c8_i32 : i32
    %27 = tpu.iota {dimensions = array<i32: 0>} : vector<8x128xi32>
    %28 = vector.broadcast %26 : i32 to vector<8x128xi32>
    %29 = arith.addi %28, %27 : vector<8x128xi32>
    %c2_i32 = arith.constant 2 : i32
    %30 = vector.broadcast %c2_i32 : i32 to vector<8x128xi32>
    %31 = arith.cmpi slt, %29, %30 : vector<8x128xi32>
    %cst = arith.constant 0.000000e+00 : f32
    %32 = vector.broadcast %cst : f32 to vector<8x128xf32>
    %33 = arith.select %31, %25, %32 : vector<8x128xi1>, vector<8x128xf32>
    %cst_20 = arith.constant dense<0.000000e+00> : vector<128xf32>
    %34 = vector.multi_reduction <add>, %33, %cst_20 [0] : vector<8x128xf32> to vector<128xf32>
    %35 = vector.shape_cast %34 : vector<128xf32> to vector<1x1x128xf32>
    %c0_21 = arith.constant 0 : index
    %c0_22 = arith.constant 0 : index
    %c0_23 = arith.constant 0 : index
    %36 = vector.load %arg12[%c0_21, %c0_22, %c0_23] : memref<1x1x128xf32, #tpu.memory_space<vmem>>, vector<1x1x128xf32>
    tpu.vector_store %arg12[%c0_21, %c0_22, %c0_23], %35 {strides = array<i32>} : memref<1x1x128xf32, #tpu.memory_space<vmem>>, vector<1x1x128xf32>,
    return
  }
  func.func @transform_0(%arg0: i32, %arg1: memref<1xf32, #tpu.memory_space<smem>>) -> (i32, i32) {
    %c0_i32 = arith.constant 0 : i32
    %c0_i32_0 = arith.constant 0 : i32
    return %arg0, %c0_i32 : i32, i32
  }
  func.func @transform_1(%arg0: i32, %arg1: memref<1xf32, #tpu.memory_space<smem>>) -> (i32, i32) {
    %c0_i32 = arith.constant 0 : i32
    %c0_i32_0 = arith.constant 0 : i32
    return %arg0, %c0_i32 : i32, i32
  }
  func.func @transform_2(%arg0: i32, %arg1: memref<1xf32, #tpu.memory_space<smem>>) -> (i32, i32) {
    %c0_i32 = arith.constant 0 : i32
    %c0_i32_0 = arith.constant 0 : i32
    return %arg0, %c0_i32 : i32, i32
  }
  func.func @transform_3(%arg0: i32, %arg1: memref<1xf32, #tpu.memory_space<smem>>) -> (i32, i32) {
    %c0_i32 = arith.constant 0 : i32
    %c0_i32_0 = arith.constant 0 : i32
    return %arg0, %c0_i32 : i32, i32
  }
  func.func @transform_4(%arg0: i32, %arg1: memref<1xf32, #tpu.memory_space<smem>>) -> (i32, i32) {
    %c0_i32 = arith.constant 0 : i32
    %c0_i32_0 = arith.constant 0 : i32
    return %arg0, %c0_i32 : i32, i32
  }
  func.func @transform_5(%arg0: i32, %arg1: memref<1xf32, #tpu.memory_space<smem>>) -> (i32, i32) {
    %c0_i32 = arith.constant 0 : i32
    %c0_i32_0 = arith.constant 0 : i32
    return %arg0, %c0_i32 : i32, i32
  }
  func.func @transform_6(%arg0: i32, %arg1: memref<1xf32, #tpu.memory_space<smem>>) -> (i32, i32) {
    %c0_i32 = arith.constant 0 : i32
    %c0_i32_0 = arith.constant 0 : i32
    return %arg0, %c0_i32 : i32, i32
  }
  func.func @transform_7(%arg0: i32, %arg1: memref<1xf32, #tpu.memory_space<smem>>) -> (i32, i32) {
    %c0_i32 = arith.constant 0 : i32
    %c0_i32_0 = arith.constant 0 : i32
    return %arg0, %c0_i32 : i32, i32
  }
  func.func @transform_8(%arg0: i32, %arg1: memref<1xf32, #tpu.memory_space<smem>>) -> (i32, i32) {
    %c0_i32 = arith.constant 0 : i32
    %c0_i32_0 = arith.constant 0 : i32
    return %arg0, %c0_i32 : i32, i32
  }
  func.func @transform_9(%arg0: i32, %arg1: memref<1xf32, #tpu.memory_space<smem>>) -> (i32, i32) {
    %c0_i32 = arith.constant 0 : i32
    %c0_i32_0 = arith.constant 0 : i32
    return %arg0, %c0_i32 : i32, i32
  }
  func.func @transform_10(%arg0: i32, %arg1: memref<1xf32, #tpu.memory_space<smem>>) -> (i32, i32, i32) {
    %c0_i32 = arith.constant 0 : i32
    %c0_i32_0 = arith.constant 0 : i32
    %c0_i32_1 = arith.constant 0 : i32
    return %arg0, %c0_i32, %c0_i32_0 : i32, i32, i32
  }
}

</mosaic_0001>

<bundles_post_ra>
// kernel: tpu_custom_call.1
= control target key start
LH: loop header
LB: loop body
LE: loop exit
PB: predicated region body
PF: predicated region fallthrough
CT: control target
= control target key end

     0   :  { %18 = vsyncpa [#allocation5], 0  ;;  %s402_s0 = inlined_call_operand.<no memory space> [shape: f32[1], index: 0, kind: input, shape index: {}]   ;;  %s403_s1 = inlined_call_operand.vmem [shape: f32[2,128], index: 1, kind: input, shape index: {}]   ;;  %s404_s2 = inlined_call_operand.vmem [shape: f32[2,128], index: 2, kind: input, shape index: {}]   ;;  %s405_s3 = inlined_call_operand.vmem [shape: f32[2,128], index: 3, kind: input, shape index: {}]   ;;  %s406_s4 = inlined_call_operand.vmem [shape: f32[2,128], index: 4, kind: input, shape index: {}]   ;;  %s407_s5 = inlined_call_operand.vmem [shape: f32[2,128], index: 5, kind: input, shape index: {}]   ;;  %s408_s6 = inlined_call_operand.vmem [shape: f32[2,128], index: 6, kind: input, shape index: {}]   ;;  %s409_s7 = inlined_call_operand.vmem [shape: f32[2,128], index: 7, kind: input, shape index: {}]   ;;  %s410_s8 = inlined_call_operand.hbm [shape: f32[2,128], index: 8, kind: output, shape index: {0}]   ;;  %s411_s9 = inlined_call_operand.hbm [shape: f32[2,128], index: 9, kind: output, shape index: {1}]   ;;  %s412_s10 = inlined_call_operand.hbm [shape: f32[2,128], index: 10, kind: output, shape index: {2}]   ;;  %s413_s11 = inlined_call_operand.hbm [shape: f32[1,1,128], index: 11, kind: output, shape index: {3}]  }
   0x1   :  { %19 = vsyncpa [#allocation7], 0 }
   0x2   :  { %20 = vsyncpa [#allocation10], 0  ;;  %v36_v0 = vld [vmem:[%s409_s7] sm:$0xff]  ;;  %v37_v1 = vstv %s402_s0  ;;  %v75_v3 = vlaneseq }
   0x3   :  { %v42_v2 = vld [vmem:[%s403_s1] sm:$0xff]  ;;  %v38_v4 = vadd.f32 %v37_v1, %v36_v0 }
   0x4   :  { %v43_v5 = vld [vmem:[%s404_s2] sm:$0xff]  ;;  %v45_v6 = vmul.f32 %v42_v2, %v42_v2  ;;  %v76_v17 = vshrl.u32 %v75_v3, 7 }
   0x5   :  { %v44_v7 = vld [vmem:[%s405_s3] sm:$0xff]  ;;  %v46_v9 = vmul.f32 %v43_v5, %v43_v5  ;;  %v39_v14 = vmul.f32 1.442695, %v38_v4 }
   0x6   :  { %v66_v8 = vld [vmem:[%s406_s4] sm:$0xff]  ;;  %v56_v10 = vmul.f32 %v44_v7, %v44_v7  ;;  %vm79_vm0 = vcmp.lt.s32.totalorder %v76_v17, 2 }
   0x7   :  { %v67_v11 = vmul.f32 %v66_v8, %v42_v2  ;;  %v68_v12 = vld [vmem:[%s407_s5] sm:$0xff]  ;;  %v47_v18 = vadd.f32 %v46_v9, %v45_v6  ;;  %155 = vpow2.f32 %v39_v14 }
   0x8   :  { %v71_v13 = vld [vmem:[%s408_s6] sm:$0xff]  ;;  %v69_v15 = vmul.f32 %v68_v12, %v43_v5 }
   0x9   :  { %v72_v16 = vmul.f32 %v71_v13, %v44_v7  ;;  %157 = vrsqrt.f32 %v47_v18  ;;  %v57_v20 = vadd.f32 %v56_v10, %v47_v18  ;;  %vm50_vm1 = vcmp.eq.f32.partialorder %v47_v18, inf }
   0xa   :  { %v70_v19 = vadd.f32 %v69_v15, %v67_v11  ;;  %v53_v28 = vand.u32 2147483648, %v47_v18  ;;  %vm52_vm2 = vcmp.eq.f32.partialorder %v47_v18, 0.0 }
   0xb   :  { %159 = vrsqrt.f32 %v57_v20  ;;  %vm60_vm3 = vcmp.eq.f32.partialorder %v57_v20, inf  ;;  %v63_v33 = vand.u32 2147483648, %v57_v20  ;;  %vm62_vm4 = vcmp.eq.f32.partialorder %v57_v20, 0.0 }
   0xc   :  { %v73_v21 = vadd.f32 %v72_v16, %v70_v19 }
   0xe   :  { %v80_v22 = vsel %vm79_vm0, %v73_v21, 0.0 }
   0xf   :  { %v81_v23 = vrot.slane %v80_v22, 4 }
  0x11   :  { %v82_v24 = vadd.f32 %v81_v23, %v80_v22  ;;  %v156_v25 = vpop.eup %155 }
  0x12   :  { %41 = vst [vmem:[#allocation4] sm:$0xff] %v156_v25 }
  0x13   :  { %v83_v26 = vrot.slane %v82_v24, 2  ;;  %v158_v27 = vpop.eup %157 }
  0x14   :  { %v49_v29 = vmul.f32 %v158_v27, %v47_v18 }
  0x15   :  { %v84_v30 = vadd.f32 %v83_v26, %v82_v24  ;;  %v160_v31 = vpop.eup %159 }
  0x16   :  { %v51_v32 = vsel %vm50_vm1, %v47_v18, %v49_v29  ;;  %v59_v36 = vmul.f32 %v160_v31, %v57_v20 }
  0x17   :  { %v85_v34 = vrot.slane %v84_v30, 1  ;;  %v54_v35 = vsel %vm52_vm2, %v53_v28, %v51_v32 }
  0x18   :  { %55 = vst [vmem:[#allocation8] sm:$0xff] %v54_v35  ;;  %v61_v38 = vsel %vm60_vm3, %v57_v20, %v59_v36 }
  0x19   :  { %v86_v37 = vadd.f32 %v85_v34, %v84_v30  ;;  %v64_v39 = vsel %vm62_vm4, %v63_v33, %v61_v38 }
  0x1a   :  { %65 = vst [vmem:[#allocation6] sm:$0xff] %v64_v39 }
  0x1b   :  { %87 = vst [vmem:[#allocation9] sm:$0x1] %v86_v37 }
  0x1c   :  { %92 = vsyncadd [#allocation5], 96  ;;  %s255_s2 = smov [#allocation4]  }
  0x1d   :  { %s93_s3 = sshll.u32 %s255_s2, 4  ;;  %s94_s3 = int_to_ptr.vmem [resolvable:$true] %s93_s3 }
  0x1e   :  { %s161_s4 = scalar_lea.vmem %s94_s3, 32  ;;  %s165_s5 = scalar_lea.vmem %s94_s3, 128 }
  0x1f   :  { %p162_p0 = scmp.ne.s32.totalorder %s94_s3, %s161_s4  ;;  %p166_p1 = scmp.lt.s32.totalorder %s94_s3, %s94_s3 }
  0x20   :  { %p167_p2 = scmp.lt.s32.totalorder %s165_s5, %s161_s4 }
  0x22   :  { %p168_p3 = por %p167_p2, %p166_p1 }
  0x24   :  { %p169_p4 = pnand %p168_p3, %p162_p0 }
  0x26   :  { %172 = shalt.err (!%p169_p4)
}
  0x27   :  { %s173_s12 = scalar_lea.hbm %s410_s8, 32 }
  0x28   :  { %p174_p5 = scmp.ne.s32.totalorder %s410_s8, %s173_s12  ;;  %p177_p6 = scmp.lt.u32.totalorder %s173_s12, %s410_s8 }
  0x2a   :  { %p179_p7 = pnand %p177_p6, %p174_p5 }
  0x2c   :  { %182 = shalt.err (!%p179_p7)
}
  0x2d   :  { %s256_s17 = smov 32   ;;  %s257_s18 = smov 2  }
  0x2e   :  { %99 = dma.vmem_to_hbm [thread:$0]  %s94_s3, 32, %s410_s8, [#allocation5], %s256_s17, %s256_s17, %s257_s18  }
  0x2f   :  { %104 = vsyncadd [#allocation7], 96  ;;  %s258_s21 = smov [#allocation6]  }
  0x30   :  { %s105_s22 = sshll.u32 %s258_s21, 4  ;;  %s106_s22 = int_to_ptr.vmem [resolvable:$true] %s105_s22 }
  0x31   :  { %s183_s23 = scalar_lea.vmem %s106_s22, 32  ;;  %s187_s24 = scalar_lea.vmem %s106_s22, 128 }
  0x32   :  { %p184_p8 = scmp.ne.s32.totalorder %s106_s22, %s183_s23  ;;  %p188_p9 = scmp.lt.s32.totalorder %s106_s22, %s106_s22 }
  0x33   :  { %p189_p10 = scmp.lt.s32.totalorder %s187_s24, %s183_s23 }
  0x35   :  { %p190_p11 = por %p189_p10, %p188_p9 }
  0x37   :  { %p191_p12 = pnand %p190_p11, %p184_p8 }
  0x39   :  { %194 = shalt.err (!%p191_p12)
}
  0x3a   :  { %s195_s7 = scalar_lea.hbm %s411_s9, 32 }
  0x3b   :  { %p196_p13 = scmp.ne.s32.totalorder %s411_s9, %s195_s7  ;;  %p199_p0 = scmp.lt.u32.totalorder %s195_s7, %s411_s9 }
  0x3d   :  { %p201_p1 = pnand %p199_p0, %p196_p13 }
  0x3f   :  { %204 = shalt.err (!%p201_p1)
}
  0x40   :  { %111 = dma.vmem_to_hbm [thread:$0]  %s106_s22, 32, %s411_s9, [#allocation7], %s256_s17, %s256_s17, %s257_s18  }
  0x41   :  { %116 = vsyncadd [#allocation7], 96  ;;  %s259_s2 = smov [#allocation8]   ;;  %s260_s4 = smov [#allocation9]  }
  0x42   :  { %s117_s3 = sshll.u32 %s259_s2, 4  ;;  %s130_s5 = sshll.u32 %s260_s4, 4  ;;  %s118_s3 = int_to_ptr.vmem [resolvable:$true] %s117_s3  ;;  %s131_s5 = int_to_ptr.vmem [resolvable:$true] %s130_s5 }
  0x43   :  { %s205_s6 = scalar_lea.vmem %s118_s3, 32  ;;  %s209_s30 = scalar_lea.vmem %s118_s3, 128 }
  0x44   :  { %p206_p2 = scmp.ne.s32.totalorder %s118_s3, %s205_s6  ;;  %p210_p3 = scmp.lt.s32.totalorder %s118_s3, %s118_s3 }
  0x45   :  { %p211_p4 = scmp.lt.s32.totalorder %s209_s30, %s205_s6 }
  0x47   :  { %p212_p5 = por %p211_p4, %p210_p3 }
  0x49   :  { %p213_p6 = pnand %p212_p5, %p206_p2 }
  0x4b   :  { %216 = shalt.err (!%p213_p6)
}
  0x4c   :  { %s217_s14 = scalar_lea.hbm %s412_s10, 32 }
  0x4d   :  { %p218_p7 = scmp.ne.s32.totalorder %s412_s10, %s217_s14  ;;  %p221_p8 = scmp.lt.u32.totalorder %s217_s14, %s412_s10 }
  0x4f   :  { %p223_p9 = pnand %p221_p8, %p218_p7 }
  0x51   :  { %226 = shalt.err (!%p223_p9)
}
  0x52   :  { %123 = dma.vmem_to_hbm [thread:$0]  %s118_s3, 32, %s412_s10, [#allocation7], %s256_s17, %s256_s17, %s257_s18  }
  0x53   :  { %s227_s22 = scalar_lea.vmem %s131_s5, 16  ;;  %s231_s23 = scalar_lea.vmem %s131_s5, 32 }
  0x54   :  { %p228_p10 = scmp.ne.s32.totalorder %s131_s5, %s227_s22  ;;  %p232_p11 = scmp.lt.s32.totalorder %s131_s5, %s131_s5 }
  0x55   :  { %p233_p12 = scmp.lt.s32.totalorder %s231_s23, %s227_s22 }
  0x57   :  { %p234_p13 = por %p233_p12, %p232_p11 }
  0x59   :  { %p235_p0 = pnand %p234_p13, %p228_p10 }
  0x5b   :  { %238 = shalt.err (!%p235_p0)
}
  0x5c   :  { %s239_s26 = scalar_lea.hbm %s413_s11, 16 }
  0x5d   :  { %p240_p1 = scmp.ne.s32.totalorder %s413_s11, %s239_s26  ;;  %p243_p2 = scmp.lt.u32.totalorder %s239_s26, %s413_s11 }
  0x5f   :  { %p245_p3 = pnand %p243_p2, %p240_p1 }
  0x61   :  { %248 = shalt.err (!%p245_p3)
}
  0x62   :  { %133 = dma.vmem_to_hbm [thread:$0]  %s131_s5, 16, %s413_s11, [#allocation10]  }
  0x63   :  { %249 = dma.done.wait [#allocation5], 128  }
  0x64   :  { %250 = vsyncadd [#allocation5], 4294967168 }
  0x65   :  { %251 = dma.done.wait [#allocation7], 256  }
  0x66   :  { %252 = vsyncadd [#allocation7], 4294967040 }
  0x67   :  { %253 = dma.done.wait [#allocation10], 16  }
  0x68   :  { %254 = vsyncadd [#allocation10], 4294967280 }
  0x69   :  { %146 = vsyncpa [#allocation5], 1 }
  0x6a   :  { %147 = vsyncpa [#allocation7], 1 }
  0x6b   :  { %148 = vsyncpa [#allocation10], 1 }

</bundles_post_ra>
